<compile_context>
chip_gen: v6e
topology: v6e:2x2x1
jax: 0.10.0
libtpu: 0.0.40
codegen_flags: <defaults>
</compile_context>

<pallas_src>
import math

import jax
import jax.numpy as jnp
from jax.experimental import pallas as pl
from jax.experimental.pallas import tpu as pltpu


def _round_up(x, m):
    return ((x + m - 1) // m) * m


def _sigmoid(x):
    # exp-based sigmoid; used only by the pure-JAX reference.
    return 1.0 / (1.0 + jnp.exp(-x))


def _make_lstm_kernel(S, G, INP, H, t_chunk, small_s):
    H4 = 4 * H

    def kernel(x_ref, w_ih_ref, w_hh_ref, b_ref,
               out_ref, h_out_ref, c_out_ref, *scratch):
        w_ih = w_ih_ref[...]            # (INP, 4H)
        w_hh = w_hh_ref[...]            # (H,   4H)
        b = b_ref[...]                  # (1,   4H)

        # Hoisted lane mask selecting the g-gate quarter of the fused 4H axis.
        lane = jax.lax.broadcasted_iota(jnp.int32, (G, H4), 1)
        is_g = jnp.logical_and(lane >= 2 * H, lane < 3 * H)

        def activate(gates):
            # One full-width EUP tanh covers all four gates:
            #   i, f, o : sigmoid(x) = 0.5 * (1 + tanh(0.5 * x))
            #   g       : tanh(x)
            t = jnp.tanh(jnp.where(is_g, gates, 0.5 * gates))
            return jnp.where(is_g, t, 0.5 * (t + 1.0))

        def cell_update(acts, h, c):
            i_g = acts[:, 0 * H:1 * H]
            f_g = acts[:, 1 * H:2 * H]
            g_g = acts[:, 2 * H:3 * H]
            o_g = acts[:, 3 * H:4 * H]
            c_new = f_g * c + i_g * g_g
            h_new = o_g * jnp.tanh(c_new)
            return h_new, c_new

        def project(x_chunk, tc):
            # one big (tc*G, INP) x (INP, 4H) MXU matmul for the whole chunk
            x2d = x_chunk.astype(jnp.float32).reshape(tc * G, INP)
            xp = jnp.dot(x2d, w_ih, preferred_element_type=jnp.float32) + b
            return xp.reshape(tc, G, H4)

        h = jnp.zeros((G, H), jnp.float32)
        c = jnp.zeros((G, H), jnp.float32)

        if small_s:
            # xp stays in registers; fully unrolled loop with static indices.
            xp = project(x_ref[...], S)
            for t in range(S):
                gates = xp[t] + jnp.dot(h, w_hh,
                                        preferred_element_type=jnp.float32)
                h, c = cell_update(activate(gates), h, c)
                out_ref[t] = h.astype(out_ref.dtype)
        else:
            xp_ref, = scratch
            for t0 in range(0, S, t_chunk):
                tc = min(t_chunk, S - t0)
                xp_ref[0:tc] = project(x_ref[t0:t0 + tc], tc)

                def step(t, carry):
                    hh, cc = carry
                    gates = xp_ref[t] + jnp.dot(
                        hh, w_hh, preferred_element_type=jnp.float32)
                    h_new, c_new = cell_update(activate(gates), hh, cc)
                    out_ref[t0 + t] = h_new.astype(out_ref.dtype)
                    return (h_new, c_new)

                h, c = jax.lax.fori_loop(0, tc, step, (h, c),
                                         unroll=min(tc, 8))

        h_out_ref[...] = h.astype(h_out_ref.dtype)
        c_out_ref[...] = c.astype(c_out_ref.dtype)

    return kernel


def encoder_lstm_forward(x, w_ih, w_hh, b_ih, b_hh, *, block_b=128):
    """Single-layer batch_first LSTM forward with nn.LSTM semantics.

    x:    (B, S, input_size)  float32
    w_ih: (4H, input_size)    (PyTorch weight_ih_l0 layout, gate order i,f,g,o)
    w_hh: (4H, H)             (PyTorch weight_hh_l0 layout)
    b_ih, b_hh: (4H,)
    returns: output (B, S, H), (hidden (1, B, H), cell (1, B, H))
    """
    B, S, IN = x.shape
    H4, H = w_hh.shape
    assert H4 == 4 * H and w_ih.shape == (H4, IN)

    # --- pad the input feature dim to a multiple of 8 (15 -> 16) ---
    pad_in = (-IN) % 8
    if pad_in:
        x = jnp.pad(x, ((0, 0), (0, 0), (0, pad_in)))
        w_ih = jnp.pad(w_ih, ((0, 0), (0, pad_in)))
    INP = IN + pad_in

    # --- fuse / transpose weights so the kernel computes y = x @ W + b ---
    w_ih_t = jnp.asarray(w_ih, jnp.float32).T                 # (INP, 4H)
    w_hh_t = jnp.asarray(w_hh, jnp.float32).T                 # (H,   4H)
    bias = (jnp.asarray(b_ih, jnp.float32) +
            jnp.asarray(b_hh, jnp.float32)).reshape(1, H4)    # (1, 4H)

    # --- batch block: always a multiple of 8 sublanes ---
    G = min(_round_up(B, 8), _round_up(block_b, 8))
    B_pad = _round_up(B, G)
    nb = B_pad // G
    if B_pad != B:
        x = jnp.pad(x, ((0, B_pad - B), (0, 0), (0, 0)))

    # contiguous per-block HBM layout, time-major within the block
    x_blk = x.reshape(nb, G, S, INP).transpose(0, 2, 1, 3)    # (nb, S, G, INP)

    small_s = S <= 32
    if small_s:
        t_chunk = S
        scratch_shapes = []
    else:
        # keep the xp scratch at <= ~8 MiB so large S/G stays v7x-VMEM-friendly
        t_chunk = max(8, min(S, (8 << 20) // max(1, G * H4 * 4)))
        scratch_shapes = [pltpu.VMEM((t_chunk, G, H4), jnp.float32)]

    kernel = _make_lstm_kernel(S, G, INP, H, t_chunk, small_s)

    # VMEM estimate: double-buffered x / out blocks + weights + h/c + scratch.
    est = (2 * S * G * (INP + H) * 4
           + 2 * (INP * H4 + H * H4 + H4 + 2 * G * H) * 4
           + (0 if small_s else t_chunk * G * H4 * 4))
    vmem_limit = int(min(est + (8 << 20), 128 << 20)) if est > (24 << 20) else None

    out_shapes = (
        jax.ShapeDtypeStruct((nb, S, G, H), jnp.float32),     # per-step h
        jax.ShapeDtypeStruct((nb, G, H), jnp.float32),        # final hidden
        jax.ShapeDtypeStruct((nb, G, H), jnp.float32),        # final cell
    )

    out_blk, hN, cN = pl.pallas_call(
        kernel,
        out_shape=out_shapes,
        grid_spec=pltpu.PrefetchScalarGridSpec(
            num_scalar_prefetch=0,
            grid=(nb,),
            in_specs=[
                pl.BlockSpec((None, S, G, INP), lambda b: (b, 0, 0, 0)),  # x block
                pl.BlockSpec((INP, H4), lambda b: (0, 0)),                # W_ih fused
                pl.BlockSpec((H, H4), lambda b: (0, 0)),                  # W_hh fused
                pl.BlockSpec((1, H4), lambda b: (0, 0)),                  # fused bias
            ],
            out_specs=[
                pl.BlockSpec((None, S, G, H), lambda b: (b, 0, 0, 0)),
                pl.BlockSpec((None, G, H), lambda b: (b, 0, 0)),
                pl.BlockSpec((None, G, H), lambda b: (b, 0, 0)),
            ],
            scratch_shapes=scratch_shapes,
        ),
        compiler_params=pltpu.CompilerParams(
            dimension_semantics=("parallel",),
            vmem_limit_bytes=vmem_limit),
    )(x_blk, w_ih_t, w_hh_t, bias)

    output = out_blk.transpose(0, 2, 1, 3).reshape(B_pad, S, H)[:B]   # (B, S, H)
    hidden = hN.reshape(B_pad, H)[:B][None]                           # (1, B, H)
    cell = cN.reshape(B_pad, H)[:B][None]                             # (1, B, H)
    return output, (hidden, cell)


def init_lstm_params(key, input_size, hidden_size):
    """PyTorch nn.LSTM default init: U(-1/sqrt(H), 1/sqrt(H)) for all params."""
    k = 1.0 / math.sqrt(hidden_size)
    ks = jax.random.split(key, 4)
    w_ih = jax.random.uniform(ks[0], (4 * hidden_size, input_size), jnp.float32, -k, k)
    w_hh = jax.random.uniform(ks[1], (4 * hidden_size, hidden_size), jnp.float32, -k, k)
    b_ih = jax.random.uniform(ks[2], (4 * hidden_size,), jnp.float32, -k, k)
    b_hh = jax.random.uniform(ks[3], (4 * hidden_size,), jnp.float32, -k, k)
    return w_ih, w_hh, b_ih, b_hh


def lstm_reference(x, w_ih, w_hh, b_ih, b_hh):
    """Pure-JAX reference with identical math (sanity check)."""
    B, S, _ = x.shape
    H = w_hh.shape[1]
    xp = jnp.einsum("bsi,gi->bsg", x, w_ih, precision="highest") + b_ih + b_hh

    def step(carry, xp_t):
        h, c = carry
        gates = xp_t + jnp.dot(h, w_hh.T, precision="highest")
        i_g = _sigmoid(gates[:, 0 * H:1 * H])
        f_g = _sigmoid(gates[:, 1 * H:2 * H])
        g_g = jnp.tanh(gates[:, 2 * H:3 * H])
        o_g = _sigmoid(gates[:, 3 * H:4 * H])
        c_new = f_g * c + i_g * g_g
        h_new = o_g * jnp.tanh(c_new)
        return (h_new, c_new), h_new

    init = (jnp.zeros((B, H), jnp.float32), jnp.zeros((B, H), jnp.float32))
    (hN, cN), ys = jax.lax.scan(step, init, jnp.transpose(xp, (1, 0, 2)))
    return jnp.transpose(ys, (1, 0, 2)), (hN[None], cN[None])


if __name__ == "__main__":
    INPUT_SIZE, HIDDEN_SIZE = 15, 32
    B, S = 2, 8

    key = jax.random.PRNGKey(0)
    kx, kw = jax.random.split(key)
    x = jax.random.normal(kx, (B, S, INPUT_SIZE), jnp.float32)
    w_ih, w_hh, b_ih, b_hh = init_lstm_params(kw, INPUT_SIZE, HIDDEN_SIZE)

    output, (hidden, cell) = encoder_lstm_forward(x, w_ih, w_hh, b_ih, b_hh)
    jax.block_until_ready((output, hidden, cell))

    assert output.shape == (B, S, HIDDEN_SIZE) and output.dtype == jnp.float32
    assert hidden.shape == (1, B, HIDDEN_SIZE)
    assert cell.shape == (1, B, HIDDEN_SIZE)
    assert bool(jnp.all(jnp.isfinite(output)))
    assert bool(jnp.all(jnp.isfinite(hidden)))
    assert bool(jnp.all(jnp.isfinite(cell)))

    ref_out, (ref_h, ref_c) = lstm_reference(x, w_ih, w_hh, b_ih, b_hh)
    err = max(float(jnp.max(jnp.abs(output - ref_out))),
              float(jnp.max(jnp.abs(hidden - ref_h))),
              float(jnp.max(jnp.abs(cell - ref_c))))
    # Tightened from 5e-2; kept at 1e-2 to stay robust to the platform-default
    # f32 matmul precision on any TPU generation while still catching layout /
    # indexing regressions (those produce O(0.1-1) errors).
    assert err < 1e-2, f"numerical mismatch vs reference: {err}"

    print("KERNEL_OK")
</pallas_src>

<mosaic_0001>
module attributes {stable_mosaic.version = 11 : i64} {
  func.func @kernel(%arg0: i32, %arg1: memref<1x8x8x16xf32, #tpu.memory_space<vmem>>, %arg2: memref<16x128xf32, #tpu.memory_space<vmem>>, %arg3: memref<32x128xf32, #tpu.memory_space<vmem>>, %arg4: memref<1x128xf32, #tpu.memory_space<vmem>>, %arg5: memref<1x8x8x32xf32, #tpu.memory_space<vmem>>, %arg6: memref<1x8x32xf32, #tpu.memory_space<vmem>>, %arg7: memref<1x8x32xf32, #tpu.memory_space<vmem>>) attributes {dimension_semantics = [#tpu.dimension_semantics<parallel>], iteration_bounds = array<i64: 1>, scalar_prefetch = 0 : i64, scratch_operands = 0 : i64, tpu.core_type = #tpu.core_type<tc>, window_params = [{transform_indices = @transform_0, window_bounds = array<i64: 1, 8, 8, 16>}, {pipeline_mode = #tpu.pipeline_mode<synchronous>, transform_indices = @transform_1, window_bounds = array<i64: 16, 128>}, {pipeline_mode = #tpu.pipeline_mode<synchronous>, transform_indices = @transform_2, window_bounds = array<i64: 32, 128>}, {pipeline_mode = #tpu.pipeline_mode<synchronous>, transform_indices = @transform_3, window_bounds = array<i64: 1, 128>}, {transform_indices = @transform_4, window_bounds = array<i64: 1, 8, 8, 32>}, {transform_indices = @transform_5, window_bounds = array<i64: 1, 8, 32>}, {transform_indices = @transform_6, window_bounds = array<i64: 1, 8, 32>}]} {
    %c0 = arith.constant 0 : index
    %c0_0 = arith.constant 0 : index
    %0 = vector.load %arg2[%c0, %c0_0] : memref<16x128xf32, #tpu.memory_space<vmem>>, vector<16x128xf32>
    %c0_1 = arith.constant 0 : index
    %c0_2 = arith.constant 0 : index
    %1 = vector.load %arg3[%c0_1, %c0_2] : memref<32x128xf32, #tpu.memory_space<vmem>>, vector<32x128xf32>
    %c0_3 = arith.constant 0 : index
    %c0_4 = arith.constant 0 : index
    %2 = vector.load %arg4[%c0_3, %c0_4] : memref<1x128xf32, #tpu.memory_space<vmem>>, vector<1x128xf32>
    %3 = tpu.iota {dimensions = array<i32: 1>} : vector<8x128xi32>
    %c64_i32 = arith.constant 64 : i32
    %4 = vector.broadcast %c64_i32 : i32 to vector<8x128xi32>
    %5 = arith.cmpi sge, %3, %4 : vector<8x128xi32>
    %c96_i32 = arith.constant 96 : i32
    %6 = vector.broadcast %c96_i32 : i32 to vector<8x128xi32>
    %7 = arith.cmpi slt, %3, %6 : vector<8x128xi32>
    %8 = arith.andi %5, %7 : vector<8x128xi1>
    %cst = arith.constant 0.000000e+00 : f32
    %9 = vector.broadcast %cst : f32 to vector<8x32xf32>
    %cst_5 = arith.constant 0.000000e+00 : f32
    %10 = vector.broadcast %cst_5 : f32 to vector<8x32xf32>
    %c0_6 = arith.constant 0 : index
    %c0_7 = arith.constant 0 : index
    %c0_8 = arith.constant 0 : index
    %c0_9 = arith.constant 0 : index
    %11 = vector.load %arg1[%c0_6, %c0_7, %c0_8, %c0_9] : memref<1x8x8x16xf32, #tpu.memory_space<vmem>>, vector<1x8x8x16xf32>
    %12 = vector.shape_cast %11 : vector<1x8x8x16xf32> to vector<8x8x16xf32>
    %13 = vector.shape_cast %12 : vector<8x8x16xf32> to vector<64x16xf32>
    %cst_10 = arith.constant dense<0.000000e+00> : vector<64x128xf32>
    %14 = tpu.matmul %13, %0, %cst_10 {dimension_numbers = #tpu.dot_dimension_numbers<[1], [0], [0], [1], [0, 0, 1, 1], [], []>} : vector<64x16xf32>, vector<16x128xf32>, vector<64x128xf32> -> vector<64x128xf32>
    %15 = vector.broadcast %2 : vector<1x128xf32> to vector<64x128xf32>
    %16 = arith.addf %14, %15 : vector<64x128xf32>
    %17 = vector.shape_cast %16 : vector<64x128xf32> to vector<8x8x128xf32>
    %18 = vector.extract_strided_slice %17 {offsets = [0, 0, 0], sizes = [1, 8, 128], strides = [1, 1, 1]} : vector<8x8x128xf32> to vector<1x8x128xf32>
    %19 = vector.shape_cast %18 : vector<1x8x128xf32> to vector<8x128xf32>
    %cst_11 = arith.constant dense<0.000000e+00> : vector<8x128xf32>
    %20 = tpu.matmul %9, %1, %cst_11 {dimension_numbers = #tpu.dot_dimension_numbers<[1], [0], [0], [1], [0, 0, 1, 1], [], []>} : vector<8x32xf32>, vector<32x128xf32>, vector<8x128xf32> -> vector<8x128xf32>
    %21 = arith.addf %19, %20 : vector<8x128xf32>
    %cst_12 = arith.constant 5.000000e-01 : f32
    %22 = vector.broadcast %cst_12 : f32 to vector<8x128xf32>
    %23 = arith.mulf %22, %21 : vector<8x128xf32>
    %24 = arith.select %8, %21, %23 : vector<8x128xi1>, vector<8x128xf32>
    %25 = math.tanh %24 : vector<8x128xf32>
    %cst_13 = arith.constant 1.000000e+00 : f32
    %26 = vector.broadcast %cst_13 : f32 to vector<8x128xf32>
    %27 = arith.addf %25, %26 : vector<8x128xf32>
    %cst_14 = arith.constant 5.000000e-01 : f32
    %28 = vector.broadcast %cst_14 : f32 to vector<8x128xf32>
    %29 = arith.mulf %28, %27 : vector<8x128xf32>
    %30 = arith.select %8, %25, %29 : vector<8x128xi1>, vector<8x128xf32>
    %31 = vector.extract_strided_slice %30 {offsets = [0, 0], sizes = [8, 32], strides = [1, 1]} : vector<8x128xf32> to vector<8x32xf32>
    %32 = vector.extract_strided_slice %30 {offsets = [0, 32], sizes = [8, 32], strides = [1, 1]} : vector<8x128xf32> to vector<8x32xf32>
    %33 = vector.extract_strided_slice %30 {offsets = [0, 64], sizes = [8, 32], strides = [1, 1]} : vector<8x128xf32> to vector<8x32xf32>
    %34 = vector.extract_strided_slice %30 {offsets = [0, 96], sizes = [8, 32], strides = [1, 1]} : vector<8x128xf32> to vector<8x32xf32>
    %35 = arith.mulf %32, %10 : vector<8x32xf32>
    %36 = arith.mulf %31, %33 : vector<8x32xf32>
    %37 = arith.addf %35, %36 : vector<8x32xf32>
    %38 = math.tanh %37 : vector<8x32xf32>
    %39 = arith.mulf %34, %38 : vector<8x32xf32>
    %c0_15 = arith.constant 0 : index
    %c0_16 = arith.constant 0 : index
    %c0_17 = arith.constant 0 : index
    %c0_18 = arith.constant 0 : index
    %40 = vector.load %arg5[%c0_15, %c0_16, %c0_17, %c0_18] : memref<1x8x8x32xf32, #tpu.memory_space<vmem>>, vector<1x1x8x32xf32>
    %41 = vector.shape_cast %40 : vector<1x1x8x32xf32> to vector<8x32xf32>
    %42 = vector.shape_cast %39 : vector<8x32xf32> to vector<1x1x8x32xf32>
    tpu.vector_store %arg5[%c0_15, %c0_16, %c0_17, %c0_18], %42 {strides = array<i32>} : memref<1x8x8x32xf32, #tpu.memory_space<vmem>>, vector<1x1x8x32xf32>,
    %43 = vector.extract_strided_slice %17 {offsets = [1, 0, 0], sizes = [1, 8, 128], strides = [1, 1, 1]} : vector<8x8x128xf32> to vector<1x8x128xf32>
    %44 = vector.shape_cast %43 : vector<1x8x128xf32> to vector<8x128xf32>
    %cst_19 = arith.constant dense<0.000000e+00> : vector<8x128xf32>
    %45 = tpu.matmul %39, %1, %cst_19 {dimension_numbers = #tpu.dot_dimension_numbers<[1], [0], [0], [1], [0, 0, 1, 1], [], []>} : vector<8x32xf32>, vector<32x128xf32>, vector<8x128xf32> -> vector<8x128xf32>
    %46 = arith.addf %44, %45 : vector<8x128xf32>
    %cst_20 = arith.constant 5.000000e-01 : f32
    %47 = vector.broadcast %cst_20 : f32 to vector<8x128xf32>
    %48 = arith.mulf %47, %46 : vector<8x128xf32>
    %49 = arith.select %8, %46, %48 : vector<8x128xi1>, vector<8x128xf32>
    %50 = math.tanh %49 : vector<8x128xf32>
    %cst_21 = arith.constant 1.000000e+00 : f32
    %51 = vector.broadcast %cst_21 : f32 to vector<8x128xf32>
    %52 = arith.addf %50, %51 : vector<8x128xf32>
    %cst_22 = arith.constant 5.000000e-01 : f32
    %53 = vector.broadcast %cst_22 : f32 to vector<8x128xf32>
    %54 = arith.mulf %53, %52 : vector<8x128xf32>
    %55 = arith.select %8, %50, %54 : vector<8x128xi1>, vector<8x128xf32>
    %56 = vector.extract_strided_slice %55 {offsets = [0, 0], sizes = [8, 32], strides = [1, 1]} : vector<8x128xf32> to vector<8x32xf32>
    %57 = vector.extract_strided_slice %55 {offsets = [0, 32], sizes = [8, 32], strides = [1, 1]} : vector<8x128xf32> to vector<8x32xf32>
    %58 = vector.extract_strided_slice %55 {offsets = [0, 64], sizes = [8, 32], strides = [1, 1]} : vector<8x128xf32> to vector<8x32xf32>
    %59 = vector.extract_strided_slice %55 {offsets = [0, 96], sizes = [8, 32], strides = [1, 1]} : vector<8x128xf32> to vector<8x32xf32>
    %60 = arith.mulf %57, %37 : vector<8x32xf32>
    %61 = arith.mulf %56, %58 : vector<8x32xf32>
    %62 = arith.addf %60, %61 : vector<8x32xf32>
    %63 = math.tanh %62 : vector<8x32xf32>
    %64 = arith.mulf %59, %63 : vector<8x32xf32>
    %c0_23 = arith.constant 0 : index
    %c1 = arith.constant 1 : index
    %c0_24 = arith.constant 0 : index
    %c0_25 = arith.constant 0 : index
    %65 = vector.load %arg5[%c0_23, %c1, %c0_24, %c0_25] : memref<1x8x8x32xf32, #tpu.memory_space<vmem>>, vector<1x1x8x32xf32>
    %66 = vector.shape_cast %65 : vector<1x1x8x32xf32> to vector<8x32xf32>
    %67 = vector.shape_cast %64 : vector<8x32xf32> to vector<1x1x8x32xf32>
    tpu.vector_store %arg5[%c0_23, %c1, %c0_24, %c0_25], %67 {strides = array<i32>} : memref<1x8x8x32xf32, #tpu.memory_space<vmem>>, vector<1x1x8x32xf32>,
    %68 = vector.extract_strided_slice %17 {offsets = [2, 0, 0], sizes = [1, 8, 128], strides = [1, 1, 1]} : vector<8x8x128xf32> to vector<1x8x128xf32>
    %69 = vector.shape_cast %68 : vector<1x8x128xf32> to vector<8x128xf32>
    %cst_26 = arith.constant dense<0.000000e+00> : vector<8x128xf32>
    %70 = tpu.matmul %64, %1, %cst_26 {dimension_numbers = #tpu.dot_dimension_numbers<[1], [0], [0], [1], [0, 0, 1, 1], [], []>} : vector<8x32xf32>, vector<32x128xf32>, vector<8x128xf32> -> vector<8x128xf32>
    %71 = arith.addf %69, %70 : vector<8x128xf32>
    %cst_27 = arith.constant 5.000000e-01 : f32
    %72 = vector.broadcast %cst_27 : f32 to vector<8x128xf32>
    %73 = arith.mulf %72, %71 : vector<8x128xf32>
    %74 = arith.select %8, %71, %73 : vector<8x128xi1>, vector<8x128xf32>
    %75 = math.tanh %74 : vector<8x128xf32>
    %cst_28 = arith.constant 1.000000e+00 : f32
    %76 = vector.broadcast %cst_28 : f32 to vector<8x128xf32>
    %77 = arith.addf %75, %76 : vector<8x128xf32>
    %cst_29 = arith.constant 5.000000e-01 : f32
    %78 = vector.broadcast %cst_29 : f32 to vector<8x128xf32>
    %79 = arith.mulf %78, %77 : vector<8x128xf32>
    %80 = arith.select %8, %75, %79 : vector<8x128xi1>, vector<8x128xf32>
    %81 = vector.extract_strided_slice %80 {offsets = [0, 0], sizes = [8, 32], strides = [1, 1]} : vector<8x128xf32> to vector<8x32xf32>
    %82 = vector.extract_strided_slice %80 {offsets = [0, 32], sizes = [8, 32], strides = [1, 1]} : vector<8x128xf32> to vector<8x32xf32>
    %83 = vector.extract_strided_slice %80 {offsets = [0, 64], sizes = [8, 32], strides = [1, 1]} : vector<8x128xf32> to vector<8x32xf32>
    %84 = vector.extract_strided_slice %80 {offsets = [0, 96], sizes = [8, 32], strides = [1, 1]} : vector<8x128xf32> to vector<8x32xf32>
    %85 = arith.mulf %82, %62 : vector<8x32xf32>
    %86 = arith.mulf %81, %83 : vector<8x32xf32>
    %87 = arith.addf %85, %86 : vector<8x32xf32>
    %88 = math.tanh %87 : vector<8x32xf32>
    %89 = arith.mulf %84, %88 : vector<8x32xf32>
    %c0_30 = arith.constant 0 : index
    %c2 = arith.constant 2 : index
    %c0_31 = arith.constant 0 : index
    %c0_32 = arith.constant 0 : index
    %90 = vector.load %arg5[%c0_30, %c2, %c0_31, %c0_32] : memref<1x8x8x32xf32, #tpu.memory_space<vmem>>, vector<1x1x8x32xf32>
    %91 = vector.shape_cast %90 : vector<1x1x8x32xf32> to vector<8x32xf32>
    %92 = vector.shape_cast %89 : vector<8x32xf32> to vector<1x1x8x32xf32>
    tpu.vector_store %arg5[%c0_30, %c2, %c0_31, %c0_32], %92 {strides = array<i32>} : memref<1x8x8x32xf32, #tpu.memory_space<vmem>>, vector<1x1x8x32xf32>,
    %93 = vector.extract_strided_slice %17 {offsets = [3, 0, 0], sizes = [1, 8, 128], strides = [1, 1, 1]} : vector<8x8x128xf32> to vector<1x8x128xf32>
    %94 = vector.shape_cast %93 : vector<1x8x128xf32> to vector<8x128xf32>
    %cst_33 = arith.constant dense<0.000000e+00> : vector<8x128xf32>
    %95 = tpu.matmul %89, %1, %cst_33 {dimension_numbers = #tpu.dot_dimension_numbers<[1], [0], [0], [1], [0, 0, 1, 1], [], []>} : vector<8x32xf32>, vector<32x128xf32>, vector<8x128xf32> -> vector<8x128xf32>
    %96 = arith.addf %94, %95 : vector<8x128xf32>
    %cst_34 = arith.constant 5.000000e-01 : f32
    %97 = vector.broadcast %cst_34 : f32 to vector<8x128xf32>
    %98 = arith.mulf %97, %96 : vector<8x128xf32>
    %99 = arith.select %8, %96, %98 : vector<8x128xi1>, vector<8x128xf32>
    %100 = math.tanh %99 : vector<8x128xf32>
    %cst_35 = arith.constant 1.000000e+00 : f32
    %101 = vector.broadcast %cst_35 : f32 to vector<8x128xf32>
    %102 = arith.addf %100, %101 : vector<8x128xf32>
    %cst_36 = arith.constant 5.000000e-01 : f32
    %103 = vector.broadcast %cst_36 : f32 to vector<8x128xf32>
    %104 = arith.mulf %103, %102 : vector<8x128xf32>
    %105 = arith.select %8, %100, %104 : vector<8x128xi1>, vector<8x128xf32>
    %106 = vector.extract_strided_slice %105 {offsets = [0, 0], sizes = [8, 32], strides = [1, 1]} : vector<8x128xf32> to vector<8x32xf32>
    %107 = vector.extract_strided_slice %105 {offsets = [0, 32], sizes = [8, 32], strides = [1, 1]} : vector<8x128xf32> to vector<8x32xf32>
    %108 = vector.extract_strided_slice %105 {offsets = [0, 64], sizes = [8, 32], strides = [1, 1]} : vector<8x128xf32> to vector<8x32xf32>
    %109 = vector.extract_strided_slice %105 {offsets = [0, 96], sizes = [8, 32], strides = [1, 1]} : vector<8x128xf32> to vector<8x32xf32>
    %110 = arith.mulf %107, %87 : vector<8x32xf32>
    %111 = arith.mulf %106, %108 : vector<8x32xf32>
    %112 = arith.addf %110, %111 : vector<8x32xf32>
    %113 = math.tanh %112 : vector<8x32xf32>
    %114 = arith.mulf %109, %113 : vector<8x32xf32>
    %c0_37 = arith.constant 0 : index
    %c3 = arith.constant 3 : index
    %c0_38 = arith.constant 0 : index
    %c0_39 = arith.constant 0 : index
    %115 = vector.load %arg5[%c0_37, %c3, %c0_38, %c0_39] : memref<1x8x8x32xf32, #tpu.memory_space<vmem>>, vector<1x1x8x32xf32>
    %116 = vector.shape_cast %115 : vector<1x1x8x32xf32> to vector<8x32xf32>
    %117 = vector.shape_cast %114 : vector<8x32xf32> to vector<1x1x8x32xf32>
    tpu.vector_store %arg5[%c0_37, %c3, %c0_38, %c0_39], %117 {strides = array<i32>} : memref<1x8x8x32xf32, #tpu.memory_space<vmem>>, vector<1x1x8x32xf32>,
    %118 = vector.extract_strided_slice %17 {offsets = [4, 0, 0], sizes = [1, 8, 128], strides = [1, 1, 1]} : vector<8x8x128xf32> to vector<1x8x128xf32>
    %119 = vector.shape_cast %118 : vector<1x8x128xf32> to vector<8x128xf32>
    %cst_40 = arith.constant dense<0.000000e+00> : vector<8x128xf32>
    %120 = tpu.matmul %114, %1, %cst_40 {dimension_numbers = #tpu.dot_dimension_numbers<[1], [0], [0], [1], [0, 0, 1, 1], [], []>} : vector<8x32xf32>, vector<32x128xf32>, vector<8x128xf32> -> vector<8x128xf32>
    %121 = arith.addf %119, %120 : vector<8x128xf32>
    %cst_41 = arith.constant 5.000000e-01 : f32
    %122 = vector.broadcast %cst_41 : f32 to vector<8x128xf32>
    %123 = arith.mulf %122, %121 : vector<8x128xf32>
    %124 = arith.select %8, %121, %123 : vector<8x128xi1>, vector<8x128xf32>
    %125 = math.tanh %124 : vector<8x128xf32>
    %cst_42 = arith.constant 1.000000e+00 : f32
    %126 = vector.broadcast %cst_42 : f32 to vector<8x128xf32>
    %127 = arith.addf %125, %126 : vector<8x128xf32>
    %cst_43 = arith.constant 5.000000e-01 : f32
    %128 = vector.broadcast %cst_43 : f32 to vector<8x128xf32>
    %129 = arith.mulf %128, %127 : vector<8x128xf32>
    %130 = arith.select %8, %125, %129 : vector<8x128xi1>, vector<8x128xf32>
    %131 = vector.extract_strided_slice %130 {offsets = [0, 0], sizes = [8, 32], strides = [1, 1]} : vector<8x128xf32> to vector<8x32xf32>
    %132 = vector.extract_strided_slice %130 {offsets = [0, 32], sizes = [8, 32], strides = [1, 1]} : vector<8x128xf32> to vector<8x32xf32>
    %133 = vector.extract_strided_slice %130 {offsets = [0, 64], sizes = [8, 32], strides = [1, 1]} : vector<8x128xf32> to vector<8x32xf32>
    %134 = vector.extract_strided_slice %130 {offsets = [0, 96], sizes = [8, 32], strides = [1, 1]} : vector<8x128xf32> to vector<8x32xf32>
    %135 = arith.mulf %132, %112 : vector<8x32xf32>
    %136 = arith.mulf %131, %133 : vector<8x32xf32>
    %137 = arith.addf %135, %136 : vector<8x32xf32>
    %138 = math.tanh %137 : vector<8x32xf32>
    %139 = arith.mulf %134, %138 : vector<8x32xf32>
    %c0_44 = arith.constant 0 : index
    %c4 = arith.constant 4 : index
    %c0_45 = arith.constant 0 : index
    %c0_46 = arith.constant 0 : index
    %140 = vector.load %arg5[%c0_44, %c4, %c0_45, %c0_46] : memref<1x8x8x32xf32, #tpu.memory_space<vmem>>, vector<1x1x8x32xf32>
    %141 = vector.shape_cast %140 : vector<1x1x8x32xf32> to vector<8x32xf32>
    %142 = vector.shape_cast %139 : vector<8x32xf32> to vector<1x1x8x32xf32>
    tpu.vector_store %arg5[%c0_44, %c4, %c0_45, %c0_46], %142 {strides = array<i32>} : memref<1x8x8x32xf32, #tpu.memory_space<vmem>>, vector<1x1x8x32xf32>,
    %143 = vector.extract_strided_slice %17 {offsets = [5, 0, 0], sizes = [1, 8, 128], strides = [1, 1, 1]} : vector<8x8x128xf32> to vector<1x8x128xf32>
    %144 = vector.shape_cast %143 : vector<1x8x128xf32> to vector<8x128xf32>
    %cst_47 = arith.constant dense<0.000000e+00> : vector<8x128xf32>
    %145 = tpu.matmul %139, %1, %cst_47 {dimension_numbers = #tpu.dot_dimension_numbers<[1], [0], [0], [1], [0, 0, 1, 1], [], []>} : vector<8x32xf32>, vector<32x128xf32>, vector<8x128xf32> -> vector<8x128xf32>
    %146 = arith.addf %144, %145 : vector<8x128xf32>
    %cst_48 = arith.constant 5.000000e-01 : f32
    %147 = vector.broadcast %cst_48 : f32 to vector<8x128xf32>
    %148 = arith.mulf %147, %146 : vector<8x128xf32>
    %149 = arith.select %8, %146, %148 : vector<8x128xi1>, vector<8x128xf32>
    %150 = math.tanh %149 : vector<8x128xf32>
    %cst_49 = arith.constant 1.000000e+00 : f32
    %151 = vector.broadcast %cst_49 : f32 to vector<8x128xf32>
    %152 = arith.addf %150, %151 : vector<8x128xf32>
    %cst_50 = arith.constant 5.000000e-01 : f32
    %153 = vector.broadcast %cst_50 : f32 to vector<8x128xf32>
    %154 = arith.mulf %153, %152 : vector<8x128xf32>
    %155 = arith.select %8, %150, %154 : vector<8x128xi1>, vector<8x128xf32>
    %156 = vector.extract_strided_slice %155 {offsets = [0, 0], sizes = [8, 32], strides = [1, 1]} : vector<8x128xf32> to vector<8x32xf32>
    %157 = vector.extract_strided_slice %155 {offsets = [0, 32], sizes = [8, 32], strides = [1, 1]} : vector<8x128xf32> to vector<8x32xf32>
    %158 = vector.extract_strided_slice %155 {offsets = [0, 64], sizes = [8, 32], strides = [1, 1]} : vector<8x128xf32> to vector<8x32xf32>
    %159 = vector.extract_strided_slice %155 {offsets = [0, 96], sizes = [8, 32], strides = [1, 1]} : vector<8x128xf32> to vector<8x32xf32>
    %160 = arith.mulf %157, %137 : vector<8x32xf32>
    %161 = arith.mulf %156, %158 : vector<8x32xf32>
    %162 = arith.addf %160, %161 : vector<8x32xf32>
    %163 = math.tanh %162 : vector<8x32xf32>
    %164 = arith.mulf %159, %163 : vector<8x32xf32>
    %c0_51 = arith.constant 0 : index
    %c5 = arith.constant 5 : index
    %c0_52 = arith.constant 0 : index
    %c0_53 = arith.constant 0 : index
    %165 = vector.load %arg5[%c0_51, %c5, %c0_52, %c0_53] : memref<1x8x8x32xf32, #tpu.memory_space<vmem>>, vector<1x1x8x32xf32>
    %166 = vector.shape_cast %165 : vector<1x1x8x32xf32> to vector<8x32xf32>
    %167 = vector.shape_cast %164 : vector<8x32xf32> to vector<1x1x8x32xf32>
    tpu.vector_store %arg5[%c0_51, %c5, %c0_52, %c0_53], %167 {strides = array<i32>} : memref<1x8x8x32xf32, #tpu.memory_space<vmem>>, vector<1x1x8x32xf32>,
    %168 = vector.extract_strided_slice %17 {offsets = [6, 0, 0], sizes = [1, 8, 128], strides = [1, 1, 1]} : vector<8x8x128xf32> to vector<1x8x128xf32>
    %169 = vector.shape_cast %168 : vector<1x8x128xf32> to vector<8x128xf32>
    %cst_54 = arith.constant dense<0.000000e+00> : vector<8x128xf32>
    %170 = tpu.matmul %164, %1, %cst_54 {dimension_numbers = #tpu.dot_dimension_numbers<[1], [0], [0], [1], [0, 0, 1, 1], [], []>} : vector<8x32xf32>, vector<32x128xf32>, vector<8x128xf32> -> vector<8x128xf32>
    %171 = arith.addf %169, %170 : vector<8x128xf32>
    %cst_55 = arith.constant 5.000000e-01 : f32
    %172 = vector.broadcast %cst_55 : f32 to vector<8x128xf32>
    %173 = arith.mulf %172, %171 : vector<8x128xf32>
    %174 = arith.select %8, %171, %173 : vector<8x128xi1>, vector<8x128xf32>
    %175 = math.tanh %174 : vector<8x128xf32>
    %cst_56 = arith.constant 1.000000e+00 : f32
    %176 = vector.broadcast %cst_56 : f32 to vector<8x128xf32>
    %177 = arith.addf %175, %176 : vector<8x128xf32>
    %cst_57 = arith.constant 5.000000e-01 : f32
    %178 = vector.broadcast %cst_57 : f32 to vector<8x128xf32>
    %179 = arith.mulf %178, %177 : vector<8x128xf32>
    %180 = arith.select %8, %175, %179 : vector<8x128xi1>, vector<8x128xf32>
    %181 = vector.extract_strided_slice %180 {offsets = [0, 0], sizes = [8, 32], strides = [1, 1]} : vector<8x128xf32> to vector<8x32xf32>
    %182 = vector.extract_strided_slice %180 {offsets = [0, 32], sizes = [8, 32], strides = [1, 1]} : vector<8x128xf32> to vector<8x32xf32>
    %183 = vector.extract_strided_slice %180 {offsets = [0, 64], sizes = [8, 32], strides = [1, 1]} : vector<8x128xf32> to vector<8x32xf32>
    %184 = vector.extract_strided_slice %180 {offsets = [0, 96], sizes = [8, 32], strides = [1, 1]} : vector<8x128xf32> to vector<8x32xf32>
    %185 = arith.mulf %182, %162 : vector<8x32xf32>
    %186 = arith.mulf %181, %183 : vector<8x32xf32>
    %187 = arith.addf %185, %186 : vector<8x32xf32>
    %188 = math.tanh %187 : vector<8x32xf32>
    %189 = arith.mulf %184, %188 : vector<8x32xf32>
    %c0_58 = arith.constant 0 : index
    %c6 = arith.constant 6 : index
    %c0_59 = arith.constant 0 : index
    %c0_60 = arith.constant 0 : index
    %190 = vector.load %arg5[%c0_58, %c6, %c0_59, %c0_60] : memref<1x8x8x32xf32, #tpu.memory_space<vmem>>, vector<1x1x8x32xf32>
    %191 = vector.shape_cast %190 : vector<1x1x8x32xf32> to vector<8x32xf32>
    %192 = vector.shape_cast %189 : vector<8x32xf32> to vector<1x1x8x32xf32>
    tpu.vector_store %arg5[%c0_58, %c6, %c0_59, %c0_60], %192 {strides = array<i32>} : memref<1x8x8x32xf32, #tpu.memory_space<vmem>>, vector<1x1x8x32xf32>,
    %193 = vector.extract_strided_slice %17 {offsets = [7, 0, 0], sizes = [1, 8, 128], strides = [1, 1, 1]} : vector<8x8x128xf32> to vector<1x8x128xf32>
    %194 = vector.shape_cast %193 : vector<1x8x128xf32> to vector<8x128xf32>
    %cst_61 = arith.constant dense<0.000000e+00> : vector<8x128xf32>
    %195 = tpu.matmul %189, %1, %cst_61 {dimension_numbers = #tpu.dot_dimension_numbers<[1], [0], [0], [1], [0, 0, 1, 1], [], []>} : vector<8x32xf32>, vector<32x128xf32>, vector<8x128xf32> -> vector<8x128xf32>
    %196 = arith.addf %194, %195 : vector<8x128xf32>
    %cst_62 = arith.constant 5.000000e-01 : f32
    %197 = vector.broadcast %cst_62 : f32 to vector<8x128xf32>
    %198 = arith.mulf %197, %196 : vector<8x128xf32>
    %199 = arith.select %8, %196, %198 : vector<8x128xi1>, vector<8x128xf32>
    %200 = math.tanh %199 : vector<8x128xf32>
    %cst_63 = arith.constant 1.000000e+00 : f32
    %201 = vector.broadcast %cst_63 : f32 to vector<8x128xf32>
    %202 = arith.addf %200, %201 : vector<8x128xf32>
    %cst_64 = arith.constant 5.000000e-01 : f32
    %203 = vector.broadcast %cst_64 : f32 to vector<8x128xf32>
    %204 = arith.mulf %203, %202 : vector<8x128xf32>
    %205 = arith.select %8, %200, %204 : vector<8x128xi1>, vector<8x128xf32>
    %206 = vector.extract_strided_slice %205 {offsets = [0, 0], sizes = [8, 32], strides = [1, 1]} : vector<8x128xf32> to vector<8x32xf32>
    %207 = vector.extract_strided_slice %205 {offsets = [0, 32], sizes = [8, 32], strides = [1, 1]} : vector<8x128xf32> to vector<8x32xf32>
    %208 = vector.extract_strided_slice %205 {offsets = [0, 64], sizes = [8, 32], strides = [1, 1]} : vector<8x128xf32> to vector<8x32xf32>
    %209 = vector.extract_strided_slice %205 {offsets = [0, 96], sizes = [8, 32], strides = [1, 1]} : vector<8x128xf32> to vector<8x32xf32>
    %210 = arith.mulf %207, %187 : vector<8x32xf32>
    %211 = arith.mulf %206, %208 : vector<8x32xf32>
    %212 = arith.addf %210, %211 : vector<8x32xf32>
    %213 = math.tanh %212 : vector<8x32xf32>
    %214 = arith.mulf %209, %213 : vector<8x32xf32>
    %c0_65 = arith.constant 0 : index
    %c7 = arith.constant 7 : index
    %c0_66 = arith.constant 0 : index
    %c0_67 = arith.constant 0 : index
    %215 = vector.load %arg5[%c0_65, %c7, %c0_66, %c0_67] : memref<1x8x8x32xf32, #tpu.memory_space<vmem>>, vector<1x1x8x32xf32>
    %216 = vector.shape_cast %215 : vector<1x1x8x32xf32> to vector<8x32xf32>
    %217 = vector.shape_cast %214 : vector<8x32xf32> to vector<1x1x8x32xf32>
    tpu.vector_store %arg5[%c0_65, %c7, %c0_66, %c0_67], %217 {strides = array<i32>} : memref<1x8x8x32xf32, #tpu.memory_space<vmem>>, vector<1x1x8x32xf32>,
    %c0_68 = arith.constant 0 : index
    %c0_69 = arith.constant 0 : index
    %c0_70 = arith.constant 0 : index
    %218 = vector.load %arg6[%c0_68, %c0_69, %c0_70] : memref<1x8x32xf32, #tpu.memory_space<vmem>>, vector<1x8x32xf32>
    %219 = vector.shape_cast %218 : vector<1x8x32xf32> to vector<8x32xf32>
    %220 = vector.shape_cast %214 : vector<8x32xf32> to vector<1x8x32xf32>
    tpu.vector_store %arg6[%c0_68, %c0_69, %c0_70], %220 {strides = array<i32>} : memref<1x8x32xf32, #tpu.memory_space<vmem>>, vector<1x8x32xf32>,
    %c0_71 = arith.constant 0 : index
    %c0_72 = arith.constant 0 : index
    %c0_73 = arith.constant 0 : index
    %221 = vector.load %arg7[%c0_71, %c0_72, %c0_73] : memref<1x8x32xf32, #tpu.memory_space<vmem>>, vector<1x8x32xf32>
    %222 = vector.shape_cast %221 : vector<1x8x32xf32> to vector<8x32xf32>
    %223 = vector.shape_cast %212 : vector<8x32xf32> to vector<1x8x32xf32>
    tpu.vector_store %arg7[%c0_71, %c0_72, %c0_73], %223 {strides = array<i32>} : memref<1x8x32xf32, #tpu.memory_space<vmem>>, vector<1x8x32xf32>,
    return
  }
  func.func @transform_0(%arg0: i32) -> (i32, i32, i32, i32) {
    %c0_i32 = arith.constant 0 : i32
    %c0_i32_0 = arith.constant 0 : i32
    %c0_i32_1 = arith.constant 0 : i32
    %c0_i32_2 = arith.constant 0 : i32
    return %arg0, %c0_i32, %c0_i32_0, %c0_i32_1 : i32, i32, i32, i32
  }
  func.func @transform_1(%arg0: i32) -> (i32, i32) {
    %c0_i32 = arith.constant 0 : i32
    %c0_i32_0 = arith.constant 0 : i32
    %c0_i32_1 = arith.constant 0 : i32
    return %c0_i32, %c0_i32_0 : i32, i32
  }
  func.func @transform_2(%arg0: i32) -> (i32, i32) {
    %c0_i32 = arith.constant 0 : i32
    %c0_i32_0 = arith.constant 0 : i32
    %c0_i32_1 = arith.constant 0 : i32
    return %c0_i32, %c0_i32_0 : i32, i32
  }
  func.func @transform_3(%arg0: i32) -> (i32, i32) {
    %c0_i32 = arith.constant 0 : i32
    %c0_i32_0 = arith.constant 0 : i32
    %c0_i32_1 = arith.constant 0 : i32
    return %c0_i32, %c0_i32_0 : i32, i32
  }
  func.func @transform_4(%arg0: i32) -> (i32, i32, i32, i32) {
    %c0_i32 = arith.constant 0 : i32
    %c0_i32_0 = arith.constant 0 : i32
    %c0_i32_1 = arith.constant 0 : i32
    %c0_i32_2 = arith.constant 0 : i32
    return %arg0, %c0_i32, %c0_i32_0, %c0_i32_1 : i32, i32, i32, i32
  }
  func.func @transform_5(%arg0: i32) -> (i32, i32, i32) {
    %c0_i32 = arith.constant 0 : i32
    %c0_i32_0 = arith.constant 0 : i32
    %c0_i32_1 = arith.constant 0 : i32
    return %arg0, %c0_i32, %c0_i32_0 : i32, i32, i32
  }
  func.func @transform_6(%arg0: i32) -> (i32, i32, i32) {
    %c0_i32 = arith.constant 0 : i32
    %c0_i32_0 = arith.constant 0 : i32
    %c0_i32_1 = arith.constant 0 : i32
    return %arg0, %c0_i32, %c0_i32_0 : i32, i32, i32
  }
}

</mosaic_0001>

<bundles_post_ra>
// kernel: tpu_custom_call.1
= control target key start
LH: loop header
LB: loop body
LE: loop exit
PB: predicated region body
PF: predicated region fallthrough
CT: control target
= control target key end

     0   :  { %12 = vsyncpa [#allocation3], 0  ;;  %s1715_s0 = inlined_call_operand.hbm [shape: f32[1,8,8,16], index: 0, kind: input, shape index: {}]   ;;  %s1716_s1 = inlined_call_operand.hbm [shape: f32[16,128], index: 1, kind: input, shape index: {}]   ;;  %s1717_s2 = inlined_call_operand.hbm [shape: f32[32,128], index: 2, kind: input, shape index: {}]   ;;  %s1718_s3 = inlined_call_operand.vmem [shape: f32[1,128], index: 3, kind: input, shape index: {}]   ;;  %s1719_s4 = inlined_call_operand.hbm [shape: f32[1,8,8,32], index: 4, kind: output, shape index: {0}]   ;;  %s1720_s5 = inlined_call_operand.hbm [shape: f32[1,8,32], index: 5, kind: output, shape index: {1}]   ;;  %s1721_s6 = inlined_call_operand.hbm [shape: f32[1,8,32], index: 6, kind: output, shape index: {2}]  }
   0x1   :  { %13 = vsyncpa [#allocation6], 0 }
   0x2   :  { %14 = vsyncpa [#allocation4], 0 }
   0x3   :  { %15 = vsyncpa [#allocation10], 0  ;;  %s1430_s21 = smov [#allocation5]   ;;  %s1431_s23 = smov [#allocation2]  }
   0x4   :  { %s33_s22 = sshll.u32 %s1430_s21, 4  ;;  %s21_s24 = sshll.u32 %s1431_s23, 4  ;;  %s34_s22 = int_to_ptr.vmem [resolvable:$true] %s33_s22  ;;  %s22_s24 = int_to_ptr.vmem [resolvable:$true] %s21_s24 }
   0x5   :  { %s1310_s25 = scalar_lea.vmem %s34_s22, 256  ;;  %p1315_p1 = scmp.lt.s32.totalorder %s34_s22, %s34_s22 }
   0x6   :  { %p1311_p0 = scmp.ne.s32.totalorder %s34_s22, %s1310_s25  ;;  %p1316_p2 = scmp.lt.s32.totalorder %s1310_s25, %s1310_s25 }
   0x8   :  { %p1317_p3 = por %p1316_p2, %p1315_p1 }
   0xa   :  { %p1318_p4 = pnand %p1317_p3, %p1311_p0 }
   0xc   :  { %1321 = shalt.err (!%p1318_p4)
}
   0xd   :  { %s1432_s26 = smov 128   ;;  %s1433_s27 = smov 8  }
   0xe   :  { %39 = dma.hbm_to_vmem [thread:$0]  %s1716_s1, 256, %s34_s22, [#allocation6], %s1432_s26, %s1432_s26, %s1433_s27  }
   0xf   :  { %s1330_s30 = scalar_lea.vmem %s22_s24, 1024  ;;  %p1335_p6 = scmp.lt.s32.totalorder %s22_s24, %s22_s24 }
  0x10   :  { %p1331_p5 = scmp.ne.s32.totalorder %s22_s24, %s1330_s30  ;;  %p1336_p7 = scmp.lt.s32.totalorder %s1330_s30, %s1330_s30 }
  0x12   :  { %p1337_p8 = por %p1336_p7, %p1335_p6 }
  0x14   :  { %p1338_p9 = pnand %p1337_p8, %p1331_p5 }
  0x16   :  { %1341 = shalt.err (!%p1338_p9)
}
  0x17   :  { %27 = dma.hbm_to_vmem [thread:$0]  %s1715_s0, 1024, %s22_s24, [#allocation3], %s1432_s26, %s1432_s26, %s1433_s27  }
  0x18   :  { %s1434_s9 = smov [#allocation7]  }
  0x19   :  { %s45_s10 = sshll.u32 %s1434_s9, 4  ;;  %s46_s10 = int_to_ptr.vmem [resolvable:$true] %s45_s10 }
  0x1a   :  { %s1350_s11 = scalar_lea.vmem %s46_s10, 512  ;;  %p1355_p11 = scmp.lt.s32.totalorder %s46_s10, %s46_s10 }
  0x1b   :  { %p1351_p10 = scmp.ne.s32.totalorder %s46_s10, %s1350_s11  ;;  %p1356_p12 = scmp.lt.s32.totalorder %s1350_s11, %s1350_s11 }
  0x1d   :  { %p1357_p13 = por %p1356_p12, %p1355_p11 }
  0x1f   :  { %p1358_p0 = pnand %p1357_p13, %p1351_p10 }
  0x21   :  { %1361 = shalt.err (!%p1358_p0)
}
  0x22   :  { %51 = dma.hbm_to_vmem [thread:$0]  %s1717_s2, 512, %s46_s10, [#allocation6], %s1432_s26, %s1432_s26, %s1433_s27  }
  0x23   :  { %1422 = dma.done.wait [#allocation3], 1024  }
  0x24   :  { %1423 = vsyncadd [#allocation3], 4294966272 }
  0x25   :  { %1424 = dma.done.wait [#allocation6], 768  }
  0x26   :  { %1425 = vsyncadd [#allocation6], 4294966528  ;;  %v1435_v0 = vmov 0.0   ;;  %vm1436_vm0 = vmmov 0   ;;  %v64_v1 = vld [vmem:[#allocation5 + $0x8] sm:$0xff]  ;;  %v63_v3 = vld [vmem:[#allocation5] sm:$0xff]  ;;  %v70_v9 = vlaneseq }
  0x27   :  { %1169 = vmatprep.subr.mxu1 %v1435_v0  ;;  %1177 = vmatprep.mubr.msk.f32.mxu1 %vm1436_vm0, %v1435_v0  ;;  %v1499_v2 = vld [vmem:[#allocation7 + $0x18] sm:$0xff]  ;;  %v1502_v4 = vld [vmem:[#allocation7 + $0x10] sm:$0xff]  ;;  %vm89_vm1 = vcmask 130048   ;;  %v1506_v7 = vld [vmem:[#allocation7 + $0x8] sm:$0xff]  ;;  %s1438_s13 = smov 32   ;;  %vm219_vm5 = vcmask 261120  }
  0x28   :  { %1153 = vmatprep.subr.mxu0 %v64_v1  ;;  %1170 = vmatpush3.msra.mxu1 %v1499_v2  ;;  %v75_v5 = vld [vmem:[#allocation2] sm:$0xff]  ;;  %v76_v6 = vld [vmem:[#allocation2 + $0x8] sm:$0xff]  ;;  %v1511_v8 = vld [vmem:[#allocation7] sm:$0xff]  ;;  %v71_v10 = vand.u32 127, %v70_v9  ;;  %s1439_s14 = smov 96   ;;  %s1440_s15 = smov [#allocation9]  }
  0x29   :  { %1154 = vmatpush3.msra.mxu0 %v64_v1  ;;  %1171 = vmatprep.subr.mxu1 %v1435_v0  ;;  %v1540_v12 = vld [vmem:[%s1718_s3] ss:$0 sm:$0xff]  ;;  %s1437_s3 = smov 64   ;;  %v77_v49 = vld [vmem:[#allocation2 + $0x10] sm:$0xff]  ;;  %v78_v50 = vld [vmem:[#allocation2 + $0x18] sm:$0xff]  ;;  %s1060_s16 = sshll.u32 %s1440_s15, 4  ;;  %s1061_s16 = int_to_ptr.vmem [resolvable:$true] %s1060_s16 }
  0x2a   :  { %1155 = vmatprep.subr.mxu0 %v63_v3  ;;  %1172 = vmatpush3.msra.mxu1 %v1502_v4  ;;  %vm72_vm2 = vcmp.ge.s32.totalorder %v71_v10, 64  ;;  %vm73_vm3 = vcmp.lt.s32.totalorder %v71_v10, 96  ;;  %v79_v51 = vld [vmem:[#allocation2 + $0x20] sm:$0xff]  ;;  %v80_v52 = vld [vmem:[#allocation2 + $0x28] sm:$0xff]  ;;  %v81_v53 = vld [vmem:[#allocation2 + $0x30] sm:$0xff]  ;;  %s1441_s17 = smov [#allocation8]   ;;  %p1367_p2 = scmp.lt.s32.totalorder %s1061_s16, %s1061_s16 }
  0x2b   :  { %1156 = vmatpush3.msra.mxu0 %v63_v3  ;;  %1157 = vmatprep.mubr.msk.f32.mxu0 %vm89_vm1, %v75_v5  ;;  %vm1543_vm4 = vmand %vm72_vm2, %vm73_vm3  ;;  %v82_v54 = vld [vmem:[#allocation2 + $0x38] sm:$0xff]  ;;  %s1047_s18 = sshll.u32 %s1441_s17, 4  ;;  %s1442_s19 = smov [#allocation11]   ;;  %s1048_s18 = int_to_ptr.vmem [resolvable:$true] %s1047_s18 }
  0x2c   :  { %1173 = vmatprep.subr.mxu1 %v1435_v0  ;;  %1158 = vmatmul.mubr.msk.f32.vlgmr.msra.gmra.mxu0 %vm89_vm1, %v76_v6  ;;  %s1070_s20 = sshll.u32 %s1442_s19, 4  ;;  %s1362_s21 = scalar_lea.vmem %s1061_s16, 128  ;;  %s1071_s20 = int_to_ptr.vmem [resolvable:$true] %s1070_s20 }
  0x2d   :  { %1174 = vmatpush3.msra.mxu1 %v1506_v7  ;;  %1191 = vmatprep.subr.mxu0 %v1435_v0  ;;  %p1363_p1 = scmp.ne.s32.totalorder %s1061_s16, %s1362_s21  ;;  %p1368_p3 = scmp.lt.s32.totalorder %s1362_s21, %s1362_s21 }
  0x2e   :  { %1175 = vmatprep.subr.mxu1 %v1435_v0  ;;  %1192 = vmatpush3.msra.mxu0 %v1499_v2 }
  0x2f   :  { %1176 = vmatpush3.msra.mxu1 %v1511_v8  ;;  %1193 = vmatprep.subr.mxu0 %v1435_v0  ;;  %p1369_p4 = por %p1368_p3, %p1367_p2 }
  0x30   :  { %1178 = vmatmul.mubr.f32.vlgmr.msra.gmra.mxu1 %v1435_v0  ;;  %1180 = vmatprep.subr.mxu1 %v1435_v0 }
  0x31   :  { %1181 = vmatpush3.msra.mxu1 %v1499_v2  ;;  %1188 = vmatprep.mubr.msk.f32.mxu1 %vm1436_vm0, %v1435_v0  ;;  %p1370_p5 = pnand %p1369_p4, %p1363_p1 }
  0x32   :  { %1182 = vmatprep.subr.mxu1 %v1435_v0  ;;  %1194 = vmatpush3.msra.mxu0 %v1502_v4 }
  0x33   :  { %1183 = vmatpush3.msra.mxu1 %v1502_v4  ;;  %1195 = vmatprep.subr.mxu0 %v1435_v0 }
  0x34   :  { %1184 = vmatprep.subr.mxu1 %v1435_v0  ;;  %1196 = vmatpush3.msra.mxu0 %v1506_v7 }
  0x35   :  { %1185 = vmatpush3.msra.mxu1 %v1506_v7  ;;  %1197 = vmatprep.subr.mxu0 %v1435_v0 }
  0x36   :  { %1186 = vmatprep.subr.mxu1 %v1435_v0  ;;  %1198 = vmatpush3.msra.mxu0 %v1511_v8 }
  0x37   :  { %1187 = vmatpush3.msra.mxu1 %v1511_v8  ;;  %1213 = vmatprep.subr.mxu0 %v1435_v0 }
  0x38   :  { %1202 = vmatprep.subr.mxu1 %v1435_v0  ;;  %1160 = vmatprep.mubr.msk.f32.mxu0 %vm89_vm1, %v77_v49 }
  0x39   :  { %1161 = vmatmul.mubr.msk.f32.gmra.mxu0 %vm89_vm1, %v78_v50 }
  0x3a   :  { %1163 = vmatprep.mubr.msk.f32.mxu0 %vm89_vm1, %v79_v51 }
  0x3d   :  { %1164 = vmatmul.mubr.msk.f32.gmra.mxu0 %vm89_vm1, %v80_v52 }
  0x3e   :  { %1166 = vmatprep.mubr.msk.f32.mxu0 %vm89_vm1, %v81_v53 }
  0x41   :  { %1167 = vmatmul.mubr.msk.f32.gmra.mxu0 %vm89_vm1, %v82_v54 }
  0x42   :  { %1199 = vmatprep.mubr.msk.f32.mxu0 %vm1436_vm0, %v1435_v0 }
  0xec   :  { %v1159_v11 = vpop.f32.mrf.mxu0 }
  0xed   :  { %v186_v34 = vadd.f32 %v1159_v11, %v1540_v12 }
  0xee   :  { %v180_v13 = vpop.f32.mrf.mxu0 }
  0xef   :  { %v181_v14 = vadd.f32 %v1540_v12, %v180_v13 }
  0xf0   :  { %v289_v15 = vpop.f32.mrf.mxu1 }
  0xf1   :  { %v293_v16 = vadd.f32 %v289_v15, %v181_v14 }
  0xf2   :  { %v1179_v18 = vpop.f32.mrf.mxu1 }
  0xf3   :  { %v294_v19 = vmul.f32 0.5, %v293_v16 }
  0xf5   :  { %v295_v20 = vsel %vm1543_vm4, %v293_v16, %v294_v19 }
  0xf6   :  { %1270 = vtanh.f32 %v295_v20 }
  0xf9   :  { %v1162_v59 = vpop.f32.mrf.mxu0 }
  0xfb   :  { %v190_v60 = vpop.f32.mrf.mxu0 }
  0xfc   :  { %v191_v3 = vadd.f32 %v1540_v12, %v190_v60 }
  0xfd   :  { %v1596_v61 = vpop.f32.mrf.mxu0 }
  0xff   :  { %v1598_v62 = vpop.f32.mrf.mxu0 }
 0x101   :  { %v1600_v63 = vpop.f32.mrf.mxu0 }
 0x103   :  { %v1271_v21 = vpop.eup %1270  ;;  %v1602_v1 = vpop.f32.mrf.mxu0 }
 0x104   :  { %v297_v22 = vadd.f32 1.0, %v1271_v21 }
 0x106   :  { %v298_v23 = vmul.f32 0.5, %v297_v22 }
 0x108   :  { %v299_v24 = vsel %vm1543_vm4, %v1271_v21, %v298_v23 }
 0x109   :  { %302 = vrot.lane.b32.xlu0 %v299_v24, %s1437_s3  ;;  %v300_v27 = vmul.f32 0.0, %v299_v24 }
 0x17b   :  { %v303_v25 = vpop.permute.xlu0 %302 }
 0x17c   :  { %v305_v26 = vmul.f32 %v303_v25, %v299_v24 }
 0x17e   :  { %307 = vrot.lane.b32.xlu0 %v305_v26, %s1438_s13 }
 0x1f0   :  { %v308_v28 = vpop.permute.xlu0 %307 }
 0x1f1   :  { %v310_v29 = vadd.f32 %v308_v28, %v300_v27  ;;  %v196_v27 = vadd.f32 %v1162_v59, %v1540_v12 }
 0x1f3   :  { %1272 = vtanh.f32 %v310_v29 }
 0x200   :  { %v1273_v30 = vpop.eup %1272 }
 0x201   :  { %313 = vrot.lane.b32.xlu1 %v1273_v30, %s1437_s3 }
 0x273   :  { %v314_v31 = vpop.permute.xlu1 %313 }
 0x274   :  { %v316_v32 = vmul.f32 %v314_v31, %v299_v24 }
 0x276   :  { %318 = vrot.lane.b32.xlu1 %v316_v32, %s1438_s13 }
 0x2e8   :  { %v319_v33 = vpop.permute.xlu1 %318 }
 0x2e9   :  { %321 = vst.msk [vmem:[#allocation8] sm:$0xff] %vm219_vm5, %v319_v33  ;;  %1189 = vmatmul.mubr.msk.f32.vlgmr.msra.gmra.mxu1 %vm219_vm5, %v319_v33 }
 0x2ea   :  { %1203 = vmatpush3.msra.mxu1 %v1499_v2  ;;  %1210 = vmatprep.mubr.msk.f32.mxu1 %vm1436_vm0, %v1435_v0 }
 0x2eb   :  { %1204 = vmatprep.subr.mxu1 %v1435_v0 }
 0x2ec   :  { %1205 = vmatpush3.msra.mxu1 %v1502_v4 }
 0x2ed   :  { %1206 = vmatprep.subr.mxu1 %v1435_v0 }
 0x2ee   :  { %1207 = vmatpush3.msra.mxu1 %v1506_v7 }
 0x2ef   :  { %1208 = vmatprep.subr.mxu1 %v1435_v0 }
 0x2f0   :  { %1209 = vmatpush3.msra.mxu1 %v1511_v8 }
 0x2f1   :  { %1224 = vmatprep.subr.mxu1 %v1435_v0 }
 0x3a9   :  { %v390_v35 = vpop.f32.mrf.mxu1 }
 0x3aa   :  { %v394_v36 = vadd.f32 %v390_v35, %v186_v34 }
 0x3ab   :  { %v1190_v37 = vpop.f32.mrf.mxu1 }
 0x3ac   :  { %v395_v38 = vmul.f32 0.5, %v394_v36 }
 0x3ae   :  { %v396_v39 = vsel %vm1543_vm4, %v394_v36, %v395_v38 }
 0x3af   :  { %1274 = vtanh.f32 %v396_v39 }
 0x3bc   :  { %v1275_v40 = vpop.eup %1274 }
 0x3bd   :  { %v398_v41 = vadd.f32 1.0, %v1275_v40 }
 0x3bf   :  { %v399_v42 = vmul.f32 0.5, %v398_v41 }
 0x3c1   :  { %v400_v43 = vsel %vm1543_vm4, %v1275_v40, %v399_v42 }
 0x3c2   :  { %403 = vrot.lane.b32.xlu0 %v400_v43, %s1437_s3  ;;  %v401_v46 = vmul.f32 %v400_v43, %v310_v29 }
 0x434   :  { %v404_v44 = vpop.permute.xlu0 %403 }
 0x435   :  { %v406_v45 = vmul.f32 %v404_v44, %v400_v43 }
 0x437   :  { %408 = vrot.lane.b32.xlu1 %v406_v45, %s1438_s13 }
 0x4a9   :  { %v409_v47 = vpop.permute.xlu1 %408 }
 0x4aa   :  { %v411_v48 = vadd.f32 %v409_v47, %v401_v46  ;;  %v201_v46 = vadd.f32 %v1540_v12, %v1598_v62 }
 0x4ac   :  { %1276 = vtanh.f32 %v411_v48 }
 0x4b9   :  { %v1277_v55 = vpop.eup %1276 }
 0x4ba   :  { %414 = vrot.lane.b32.xlu0 %v1277_v55, %s1437_s3 }
 0x52c   :  { %v415_v56 = vpop.permute.xlu0 %414 }
 0x52d   :  { %v417_v57 = vmul.f32 %v415_v56, %v400_v43 }
 0x52f   :  { %419 = vrot.lane.b32.xlu1 %v417_v57, %s1438_s13 }
 0x5a1   :  { %v420_v58 = vpop.permute.xlu1 %419 }
 0x5a2   :  { %423 = vst.msk [vmem:[#allocation8 + $0x8] sm:$0xff] %vm219_vm5, %v420_v58  ;;  %1200 = vmatmul.mubr.msk.f32.vlgmr.msra.gmra.mxu0 %vm219_vm5, %v420_v58 }
 0x5a3   :  { %1214 = vmatpush3.msra.mxu0 %v1499_v2  ;;  %1221 = vmatprep.mubr.msk.f32.mxu0 %vm1436_vm0, %v1435_v0 }
 0x5a4   :  { %1215 = vmatprep.subr.mxu0 %v1435_v0 }
 0x5a5   :  { %1216 = vmatpush3.msra.mxu0 %v1502_v4 }
 0x5a6   :  { %1217 = vmatprep.subr.mxu0 %v1435_v0 }
 0x5a7   :  { %1218 = vmatpush3.msra.mxu0 %v1506_v7 }
 0x5a8   :  { %1219 = vmatprep.subr.mxu0 %v1435_v0 }
 0x5a9   :  { %1220 = vmatpush3.msra.mxu0 %v1511_v8 }
 0x5aa   :  { %1235 = vmatprep.subr.mxu0 %v1435_v0 }
 0x662   :  { %v492_v5 = vpop.f32.mrf.mxu0 }
 0x663   :  { %v496_v6 = vadd.f32 %v492_v5, %v191_v3 }
 0x664   :  { %v1201_v9 = vpop.f32.mrf.mxu0 }
 0x665   :  { %v497_v10 = vmul.f32 0.5, %v496_v6  ;;  %v206_v9 = vadd.f32 %v1596_v61, %v1540_v12 }
 0x667   :  { %v498_v11 = vsel %vm1543_vm4, %v496_v6, %v497_v10 }
 0x668   :  { %1278 = vtanh.f32 %v498_v11 }
 0x675   :  { %v1279_v13 = vpop.eup %1278 }
 0x676   :  { %v500_v14 = vadd.f32 1.0, %v1279_v13 }
 0x678   :  { %v501_v15 = vmul.f32 0.5, %v500_v14 }
 0x67a   :  { %v502_v16 = vsel %vm1543_vm4, %v1279_v13, %v501_v15 }
 0x67b   :  { %505 = vrot.lane.b32.xlu0 %v502_v16, %s1437_s3  ;;  %v503_v20 = vmul.f32 %v502_v16, %v411_v48 }
 0x6ed   :  { %v506_v18 = vpop.permute.xlu0 %505 }
 0x6ee   :  { %v508_v19 = vmul.f32 %v506_v18, %v502_v16 }
 0x6f0   :  { %510 = vrot.lane.b32.xlu1 %v508_v19, %s1438_s13 }
 0x762   :  { %v511_v21 = vpop.permute.xlu1 %510 }
 0x763   :  { %v513_v22 = vadd.f32 %v511_v21, %v503_v20 }
 0x765   :  { %1280 = vtanh.f32 %v513_v22 }
 0x772   :  { %v1281_v23 = vpop.eup %1280 }
 0x773   :  { %516 = vrot.lane.b32.xlu0 %v1281_v23, %s1437_s3 }
 0x7e5   :  { %v517_v24 = vpop.permute.xlu0 %516 }
 0x7e6   :  { %v519_v25 = vmul.f32 %v517_v24, %v502_v16  ;;  %v211_v24 = vadd.f32 %v1540_v12, %v1602_v1 }
 0x7e8   :  { %521 = vrot.lane.b32.xlu1 %v519_v25, %s1438_s13 }
 0x85a   :  { %v522_v26 = vpop.permute.xlu1 %521 }
 0x85b   :  { %525 = vst.msk [vmem:[#allocation8 + $0x10] sm:$0xff] %vm219_vm5, %v522_v26  ;;  %1211 = vmatmul.mubr.msk.f32.vlgmr.msra.gmra.mxu1 %vm219_vm5, %v522_v26 }
 0x85c   :  { %1225 = vmatpush3.msra.mxu1 %v1499_v2  ;;  %1232 = vmatprep.mubr.msk.f32.mxu1 %vm1436_vm0, %v1435_v0 }
 0x85d   :  { %1226 = vmatprep.subr.mxu1 %v1435_v0 }
 0x85e   :  { %1227 = vmatpush3.msra.mxu1 %v1502_v4 }
 0x85f   :  { %1228 = vmatprep.subr.mxu1 %v1435_v0 }
 0x860   :  { %1229 = vmatpush3.msra.mxu1 %v1506_v7 }
 0x861   :  { %1230 = vmatprep.subr.mxu1 %v1435_v0 }
 0x862   :  { %1231 = vmatpush3.msra.mxu1 %v1511_v8 }
 0x863   :  { %1246 = vmatprep.subr.mxu1 %v1435_v0 }
 0x91b   :  { %v594_v28 = vpop.f32.mrf.mxu1 }
 0x91c   :  { %v598_v29 = vadd.f32 %v594_v28, %v196_v27 }
 0x91d   :  { %v1212_v30 = vpop.f32.mrf.mxu1 }
 0x91e   :  { %v599_v31 = vmul.f32 0.5, %v598_v29 }
 0x920   :  { %v600_v32 = vsel %vm1543_vm4, %v598_v29, %v599_v31 }
 0x921   :  { %1282 = vtanh.f32 %v600_v32 }
 0x92e   :  { %v1283_v33 = vpop.eup %1282 }
 0x92f   :  { %v602_v34 = vadd.f32 1.0, %v1283_v33 }
 0x931   :  { %v603_v35 = vmul.f32 0.5, %v602_v34 }
 0x933   :  { %v604_v36 = vsel %vm1543_vm4, %v1283_v33, %v603_v35 }
 0x934   :  { %607 = vrot.lane.b32.xlu0 %v604_v36, %s1437_s3  ;;  %v605_v39 = vmul.f32 %v604_v36, %v513_v22 }
 0x9a6   :  { %v608_v37 = vpop.permute.xlu0 %607 }
 0x9a7   :  { %v610_v38 = vmul.f32 %v608_v37, %v604_v36 }
 0x9a9   :  { %612 = vrot.lane.b32.xlu1 %v610_v38, %s1438_s13 }
 0xa1b   :  { %v613_v40 = vpop.permute.xlu1 %612 }
 0xa1c   :  { %v615_v41 = vadd.f32 %v613_v40, %v605_v39 }
 0xa1e   :  { %1284 = vtanh.f32 %v615_v41 }
 0xa2b   :  { %v1285_v42 = vpop.eup %1284 }
 0xa2c   :  { %618 = vrot.lane.b32.xlu0 %v1285_v42, %s1437_s3  ;;  %v216_v42 = vadd.f32 %v1600_v63, %v1540_v12 }
 0xa9e   :  { %v619_v43 = vpop.permute.xlu0 %618 }
 0xa9f   :  { %v621_v44 = vmul.f32 %v619_v43, %v604_v36 }
 0xaa1   :  { %623 = vrot.lane.b32.xlu1 %v621_v44, %s1438_s13 }
 0xb13   :  { %v624_v45 = vpop.permute.xlu1 %623 }
 0xb14   :  { %627 = vst.msk [vmem:[#allocation8 + $0x18] sm:$0xff] %vm219_vm5, %v624_v45  ;;  %1222 = vmatmul.mubr.msk.f32.vlgmr.msra.gmra.mxu0 %vm219_vm5, %v624_v45 }
 0xb15   :  { %1236 = vmatpush3.msra.mxu0 %v1499_v2  ;;  %1243 = vmatprep.mubr.msk.f32.mxu0 %vm1436_vm0, %v1435_v0 }
 0xb16   :  { %1237 = vmatprep.subr.mxu0 %v1435_v0 }
 0xb17   :  { %1238 = vmatpush3.msra.mxu0 %v1502_v4 }
 0xb18   :  { %1239 = vmatprep.subr.mxu0 %v1435_v0 }
 0xb19   :  { %1240 = vmatpush3.msra.mxu0 %v1506_v7 }
 0xb1a   :  { %1241 = vmatprep.subr.mxu0 %v1435_v0 }
 0xb1b   :  { %1242 = vmatpush3.msra.mxu0 %v1511_v8 }
 0xbd4   :  { %v696_v47 = vpop.f32.mrf.mxu0 }
 0xbd5   :  { %v700_v48 = vadd.f32 %v696_v47, %v201_v46 }
 0xbd6   :  { %v1223_v49 = vpop.f32.mrf.mxu0 }
 0xbd7   :  { %v701_v50 = vmul.f32 0.5, %v700_v48 }
 0xbd9   :  { %v702_v51 = vsel %vm1543_vm4, %v700_v48, %v701_v50 }
 0xbda   :  { %1286 = vtanh.f32 %v702_v51 }
 0xbe7   :  { %v1287_v52 = vpop.eup %1286 }
 0xbe8   :  { %v704_v53 = vadd.f32 1.0, %v1287_v52 }
 0xbea   :  { %v705_v54 = vmul.f32 0.5, %v704_v53 }
 0xbec   :  { %v706_v55 = vsel %vm1543_vm4, %v1287_v52, %v705_v54 }
 0xbed   :  { %709 = vrot.lane.b32.xlu0 %v706_v55, %s1437_s3  ;;  %v707_v58 = vmul.f32 %v706_v55, %v615_v41 }
 0xc5f   :  { %v710_v56 = vpop.permute.xlu0 %709 }
 0xc60   :  { %v712_v57 = vmul.f32 %v710_v56, %v706_v55 }
 0xc62   :  { %714 = vrot.lane.b32.xlu1 %v712_v57, %s1438_s13 }
 0xcd4   :  { %v715_v59 = vpop.permute.xlu1 %714 }
 0xcd5   :  { %v717_v60 = vadd.f32 %v715_v59, %v707_v58 }
 0xcd7   :  { %1288 = vtanh.f32 %v717_v60 }
 0xce4   :  { %v1289_v62 = vpop.eup %1288 }
 0xce5   :  { %720 = vrot.lane.b32.xlu0 %v1289_v62, %s1437_s3 }
 0xd57   :  { %v721_v3 = vpop.permute.xlu0 %720 }
 0xd58   :  { %v723_v5 = vmul.f32 %v721_v3, %v706_v55 }
 0xd5a   :  { %725 = vrot.lane.b32.xlu1 %v723_v5, %s1438_s13 }
 0xdcc   :  { %v726_v6 = vpop.permute.xlu1 %725 }
 0xdcd   :  { %729 = vst.msk [vmem:[#allocation8 + $0x20] sm:$0xff] %vm219_vm5, %v726_v6  ;;  %1233 = vmatmul.mubr.msk.f32.vlgmr.msra.gmra.mxu1 %vm219_vm5, %v726_v6 }
 0xdce   :  { %1247 = vmatpush3.msra.mxu1 %v1499_v2  ;;  %1254 = vmatprep.mubr.msk.f32.mxu1 %vm1436_vm0, %v1435_v0 }
 0xdcf   :  { %1248 = vmatprep.subr.mxu1 %v1435_v0 }
 0xdd0   :  { %1249 = vmatpush3.msra.mxu1 %v1502_v4 }
 0xdd1   :  { %1250 = vmatprep.subr.mxu1 %v1435_v0 }
 0xdd2   :  { %1251 = vmatpush3.msra.mxu1 %v1506_v7 }
 0xdd3   :  { %1252 = vmatprep.subr.mxu1 %v1435_v0 }
 0xdd4   :  { %1253 = vmatpush3.msra.mxu1 %v1511_v8 }
 0xe8d   :  { %v798_v10 = vpop.f32.mrf.mxu1 }
 0xe8e   :  { %v802_v2 = vadd.f32 %v798_v10, %v206_v9 }
 0xe8f   :  { %v1234_v11 = vpop.f32.mrf.mxu1 }
 0xe90   :  { %v803_v13 = vmul.f32 0.5, %v802_v2 }
 0xe92   :  { %v804_v14 = vsel %vm1543_vm4, %v802_v2, %v803_v13 }
 0xe93   :  { %1290 = vtanh.f32 %v804_v14 }
 0xea0   :  { %v1291_v4 = vpop.eup %1290 }
 0xea1   :  { %v806_v15 = vadd.f32 1.0, %v1291_v4 }
 0xea3   :  { %v807_v16 = vmul.f32 0.5, %v806_v15 }
 0xea5   :  { %v808_v7 = vsel %vm1543_vm4, %v1291_v4, %v807_v16 }
 0xea6   :  { %811 = vrot.lane.b32.xlu0 %v808_v7, %s1437_s3  ;;  %v809_v61 = vmul.f32 %v808_v7, %v717_v60 }
 0xf18   :  { %v812_v0 = vpop.permute.xlu0 %811 }
 0xf19   :  { %v814_v8 = vmul.f32 %v812_v0, %v808_v7 }
 0xf1b   :  { %816 = vrot.lane.b32.xlu1 %v814_v8, %s1438_s13 }
 0xf8d   :  { %v817_v18 = vpop.permute.xlu1 %816 }
 0xf8e   :  { %v819_v19 = vadd.f32 %v817_v18, %v809_v61 }
 0xf90   :  { %1292 = vtanh.f32 %v819_v19 }
 0xf9d   :  { %v1293_v20 = vpop.eup %1292 }
 0xf9e   :  { %822 = vrot.lane.b32.xlu0 %v1293_v20, %s1437_s3 }
0x1010   :  { %v823_v21 = vpop.permute.xlu0 %822 }
0x1011   :  { %v825_v22 = vmul.f32 %v823_v21, %v808_v7 }
0x1013   :  { %827 = vrot.lane.b32.xlu1 %v825_v22, %s1438_s13 }
0x1085   :  { %v828_v23 = vpop.permute.xlu1 %827 }
0x1086   :  { %831 = vst.msk [vmem:[#allocation8 + $0x28] sm:$0xff] %vm219_vm5, %v828_v23  ;;  %1244 = vmatmul.mubr.msk.f32.vlgmr.msra.gmra.mxu0 %vm219_vm5, %v828_v23 }
0x1146   :  { %v900_v25 = vpop.f32.mrf.mxu0 }
0x1147   :  { %v904_v26 = vadd.f32 %v900_v25, %v211_v24 }
0x1148   :  { %v1245_v27 = vpop.f32.mrf.mxu0 }
0x1149   :  { %v905_v28 = vmul.f32 0.5, %v904_v26 }
0x114b   :  { %v906_v29 = vsel %vm1543_vm4, %v904_v26, %v905_v28 }
0x114c   :  { %1294 = vtanh.f32 %v906_v29 }
0x1159   :  { %v1295_v30 = vpop.eup %1294 }
0x115a   :  { %v908_v31 = vadd.f32 1.0, %v1295_v30 }
0x115c   :  { %v909_v32 = vmul.f32 0.5, %v908_v31 }
0x115e   :  { %v910_v33 = vsel %vm1543_vm4, %v1295_v30, %v909_v32 }
0x115f   :  { %913 = vrot.lane.b32.xlu0 %v910_v33, %s1437_s3  ;;  %v911_v1 = vmul.f32 %v910_v33, %v819_v19 }
0x11d1   :  { %v914_v34 = vpop.permute.xlu0 %913 }
0x11d2   :  { %v916_v35 = vmul.f32 %v914_v34, %v910_v33 }
0x11d4   :  { %918 = vrot.lane.b32.xlu1 %v916_v35, %s1438_s13 }
0x1246   :  { %v919_v36 = vpop.permute.xlu1 %918 }
0x1247   :  { %v921_v37 = vadd.f32 %v919_v36, %v911_v1 }
0x1249   :  { %1296 = vtanh.f32 %v921_v37 }
0x1256   :  { %v1297_v38 = vpop.eup %1296 }
0x1257   :  { %924 = vrot.lane.b32.xlu0 %v1297_v38, %s1437_s3 }
0x12c9   :  { %v925_v39 = vpop.permute.xlu0 %924 }
0x12ca   :  { %v927_v40 = vmul.f32 %v925_v39, %v910_v33 }
0x12cc   :  { %929 = vrot.lane.b32.xlu1 %v927_v40, %s1438_s13 }
0x133e   :  { %v930_v41 = vpop.permute.xlu1 %929 }
0x133f   :  { %933 = vst.msk [vmem:[#allocation8 + $0x30] sm:$0xff] %vm219_vm5, %v930_v41  ;;  %1255 = vmatmul.mubr.msk.f32.vlgmr.msra.gmra.mxu1 %vm219_vm5, %v930_v41 }
0x13ff   :  { %v1002_v43 = vpop.f32.mrf.mxu1 }
0x1400   :  { %v1006_v44 = vadd.f32 %v1002_v43, %v216_v42 }
0x1401   :  { %v1256_v45 = vpop.f32.mrf.mxu1 }
0x1402   :  { %v1007_v46 = vmul.f32 0.5, %v1006_v44 }
0x1404   :  { %v1008_v47 = vsel %vm1543_vm4, %v1006_v44, %v1007_v46 }
0x1405   :  { %1298 = vtanh.f32 %v1008_v47 }
0x1412   :  { %v1299_v48 = vpop.eup %1298 }
0x1413   :  { %v1010_v49 = vadd.f32 1.0, %v1299_v48 }
0x1415   :  { %v1011_v50 = vmul.f32 0.5, %v1010_v49 }
0x1417   :  { %v1012_v51 = vsel %vm1543_vm4, %v1299_v48, %v1011_v50 }
0x1418   :  { %1015 = vrot.lane.b32.xlu0 %v1012_v51, %s1437_s3  ;;  %v1013_v12 = vmul.f32 %v1012_v51, %v921_v37 }
0x148a   :  { %v1016_v52 = vpop.permute.xlu0 %1015 }
0x148b   :  { %v1018_v53 = vmul.f32 %v1016_v52, %v1012_v51 }
0x148d   :  { %1020 = vrot.lane.b32.xlu1 %v1018_v53, %s1438_s13 }
0x14ff   :  { %v1021_v63 = vpop.permute.xlu1 %1020 }
0x1500   :  { %v1023_v54 = vadd.f32 %v1021_v63, %v1013_v12 }
0x1502   :  { %1300 = vtanh.f32 %v1023_v54 }
0x150f   :  { %v1301_v55 = vpop.eup %1300 }
0x1510   :  { %1026 = vrot.lane.b32.xlu0 %v1301_v55, %s1437_s3 }
0x1514   :  { %1038 = vrot.lane.b32.xlu0 %v1023_v54, %s1439_s14 }
0x1582   :  { %v1027_v56 = vpop.permute.xlu0 %1026 }
0x1583   :  { %v1029_v57 = vmul.f32 %v1027_v56, %v1012_v51 }
0x1585   :  { %1031 = vrot.lane.b32.xlu1 %v1029_v57, %s1438_s13 }
0x1586   :  { %v1039_v17 = vpop.permute.xlu0 %1038 }
0x1587   :  { %1041 = vst.msk [vmem:[#allocation11] sm:$0xff] %vm219_vm5, %v1039_v17 }
0x15f7   :  { %v1032_v58 = vpop.permute.xlu1 %1031 }
0x15f8   :  { %1035 = vst.msk [vmem:[#allocation8 + $0x38] sm:$0xff] %vm219_vm5, %v1032_v58  ;;  %1036 = vst.msk [vmem:[#allocation9] sm:$0xff] %vm219_vm5, %v1032_v58 }
0x15f9   :  { %1373 = shalt.err (!%p1370_p5)
}
0x15fa   :  { %1063 = dma.vmem_to_hbm [thread:$0]  %s1061_s16, 128, %s1720_s5, [#allocation10]  }
0x15fb   :  { %s1382_s24 = scalar_lea.vmem %s1048_s18, 1024  ;;  %p1387_p7 = scmp.lt.s32.totalorder %s1048_s18, %s1048_s18 }
0x15fc   :  { %p1383_p6 = scmp.ne.s32.totalorder %s1048_s18, %s1382_s24  ;;  %p1388_p8 = scmp.lt.s32.totalorder %s1382_s24, %s1382_s24 }
0x15fe   :  { %p1389_p9 = por %p1388_p8, %p1387_p7 }
0x1600   :  { %p1390_p10 = pnand %p1389_p9, %p1383_p6 }
0x1602   :  { %1393 = shalt.err (!%p1390_p10)
}
0x1603   :  { %1053 = dma.vmem_to_hbm [thread:$0]  %s1048_s18, 1024, %s1719_s4, [#allocation4], %s1432_s26, %s1432_s26, %s1433_s27  }
0x1604   :  { %s1402_s29 = scalar_lea.vmem %s1071_s20, 128  ;;  %p1407_p12 = scmp.lt.s32.totalorder %s1071_s20, %s1071_s20 }
0x1605   :  { %p1403_p11 = scmp.ne.s32.totalorder %s1071_s20, %s1402_s29  ;;  %p1408_p13 = scmp.lt.s32.totalorder %s1402_s29, %s1402_s29 }
0x1607   :  { %p1409_p0 = por %p1408_p13, %p1407_p12 }
0x1609   :  { %p1410_p1 = pnand %p1409_p0, %p1403_p11 }
0x160b   :  { %1413 = shalt.err (!%p1410_p1)
}
0x160c   :  { %1073 = dma.vmem_to_hbm [thread:$0]  %s1071_s20, 128, %s1721_s6, [#allocation10]  }
0x160d   :  { %1426 = dma.done.wait [#allocation4], 1024  }
0x160e   :  { %1427 = vsyncadd [#allocation4], 4294966272 }
0x160f   :  { %1428 = dma.done.wait [#allocation10], 256  }
0x1610   :  { %1429 = vsyncadd [#allocation10], 4294967040 }
0x1611   :  { %1083 = vsyncpa [#allocation3], 1 }
0x1612   :  { %1084 = vsyncpa [#allocation6], 1 }
0x1613   :  { %1085 = vsyncpa [#allocation4], 1 }
0x1614   :  { %1086 = vsyncpa [#allocation10], 1 }

</bundles_post_ra>
